<compile_context>
chip_gen: v7x
topology: tpu7x:2x2x1
jax: 0.10.0
libtpu: 0.0.40
codegen_flags: <defaults>
</compile_context>

<pallas_src>
import jax
import jax.numpy as jnp
from jax.experimental import pallas as pl
from jax.experimental.pallas import tpu as pltpu

N_STATES = 7                        # slider-crank generalized coordinates
DEFAULT_BATCH_TILE = 2048           # batch rows per grid step (~8 MiB f32 block)
DEFAULT_MIN_PALLAS_BATCH = 256      # below this, a plain broadcast is faster
_VMEM_LIMIT_BYTES = 32 * 1024 * 1024  # explicit: v5e's 16 MiB default is too tight
_MEGACORE_SPLIT_THRESHOLD = 512     # split single-step grids above this batch


def _cdiv(a, b):
    return (a + b - 1) // b


def _mass_matrix_kernel(diag_ref, out_ref):
    # diag_ref: (1, 7, 7)  VMEM -- constant diag(m_values)
    # out_ref:  (TB, 7, 7) VMEM -- TB batch copies of the mass matrix
    out_ref[...] = jnp.broadcast_to(diag_ref[...], out_ref.shape)


def _select_batch_tile(bs, batch_tile):
    tb = min(batch_tile, bs)
    # v7x megacore: if everything fits in one grid step but the batch is big
    # enough to split without tiny tiles, use two steps so both TensorCores
    # get work under dimension_semantics=("parallel",).
    if bs > _MEGACORE_SPLIT_THRESHOLD and _cdiv(bs, tb) < 2:
        tb = _cdiv(bs, 2)
    return max(tb, 1)


def m_net_forward(q, m, l, dtype=jnp.float32,
                  batch_tile=DEFAULT_BATCH_TILE,
                  min_pallas_batch=DEFAULT_MIN_PALLAS_BATCH):
    """Pallas equivalent of M_Net.forward.

    Args:
      q: (bs, states) array; only its batch size is used (matches PyTorch).
      m: sequence of 3 masses.
      l: sequence of (at least) 2 lengths.
      dtype: output dtype (f32 matches the reference).
      batch_tile: max batch rows written per grid step.
      min_pallas_batch: batches smaller than this use a plain-JAX broadcast.
    Returns:
      (bs, 7, 7) batched diagonal mass matrix.
    """
    bs = q.shape[0]

    m_values = jnp.array(
        [
            m[0],
            m[0],
            (1.0 / 12.0) * m[0] * l[0] ** 2,
            m[1],
            m[1],
            (1.0 / 12.0) * m[1] * l[1] ** 2,
            m[2],
        ],
        dtype=dtype,
    )
    diag = jnp.diag(m_values)  # (7, 7) constant

    if bs < min_pallas_batch:
        # Tiny batch: pallas_call launch overhead dominates a few-KiB memset.
        return jnp.broadcast_to(diag, (bs, N_STATES, N_STATES))

    tb = _select_batch_tile(bs, batch_tile)
    grid = (_cdiv(bs, tb),)
    itemsize = jnp.dtype(dtype).itemsize

    out = pl.pallas_call(
        _mass_matrix_kernel,
        out_shape=jax.ShapeDtypeStruct((bs, N_STATES, N_STATES), dtype),
        grid_spec=pltpu.PrefetchScalarGridSpec(
            num_scalar_prefetch=0,
            grid=grid,
            in_specs=[
                # Same tiny (1, 7, 7) constant block every step.
                pl.BlockSpec((1, N_STATES, N_STATES), lambda b: (0, 0, 0)),
            ],
            # Direct write in the final output shape; last two block dims equal
            # the full array dims, leading (batch) dim may be a partial block.
            out_specs=pl.BlockSpec((tb, N_STATES, N_STATES), lambda b: (b, 0, 0)),
        ),
        compiler_params=pltpu.CompilerParams(
            dimension_semantics=("parallel",),
            vmem_limit_bytes=_VMEM_LIMIT_BYTES,
        ),
        # Advisory hint so XLA can overlap this memset-like kernel with
        # neighboring ops (logical bytes; actual DMA bytes are layout-padded).
        cost_estimate=pl.CostEstimate(
            flops=0,
            transcendentals=0,
            bytes_accessed=(bs + 1) * N_STATES * N_STATES * itemsize,
        ),
    )(diag.reshape(1, N_STATES, N_STATES))

    return out


if __name__ == "__main__":
    # Deterministic "config" parameters (no checkpoint load).
    m = (1.0, 2.0, 3.0)
    l = (0.5, 0.7)

    key = jax.random.PRNGKey(0)
    bs, states = 2, N_STATES
    q = jax.random.normal(key, (bs, states), dtype=jnp.float32)

    # Reference in plain JAX.
    m_values = jnp.array(
        [m[0], m[0], (1.0 / 12.0) * m[0] * l[0] ** 2,
         m[1], m[1], (1.0 / 12.0) * m[1] * l[1] ** 2, m[2]],
        dtype=jnp.float32,
    )
    M_ref_small = jnp.broadcast_to(jnp.diag(m_values), (bs, states, states))

    # 1) Small batch, Pallas path forced (min_pallas_batch=0).
    M = jax.block_until_ready(m_net_forward(q, m, l, min_pallas_batch=0))
    assert M.shape == (bs, states, states)
    assert jnp.allclose(M, M_ref_small)

    # 2) Larger batch, not a multiple of the tile: exercises the partial last
    #    block and the two-step megacore split.
    bs2 = 1001
    q2 = jax.random.normal(key, (bs2, states), dtype=jnp.float32)
    M2 = jax.block_until_ready(m_net_forward(q2, m, l))
    M2_ref = jnp.broadcast_to(jnp.diag(m_values), (bs2, states, states))
    assert M2.shape == (bs2, states, states)
    assert jnp.allclose(M2, M2_ref)

    # 3) Small batch through the plain-JAX fallback (default threshold).
    M3 = jax.block_until_ready(m_net_forward(q, m, l))
    assert jnp.allclose(M3, M_ref_small)

    print("KERNEL_OK")
</pallas_src>

<mosaic_0001>
module attributes {stable_mosaic.version = 11 : i64} {
  func.func @_mass_matrix_kernel(%arg0: i32, %arg1: memref<1x7x7xf32, #tpu.memory_space<vmem>>, %arg2: memref<2x7x7xf32, #tpu.memory_space<vmem>>) attributes {dimension_semantics = [#tpu.dimension_semantics<parallel>], iteration_bounds = array<i64: 1>, scalar_prefetch = 0 : i64, scratch_operands = 0 : i64, tpu.core_type = #tpu.core_type<tc>, window_params = [{pipeline_mode = #tpu.pipeline_mode<synchronous>, transform_indices = @transform_0, window_bounds = array<i64: 1, 7, 7>}, {transform_indices = @transform_1, window_bounds = array<i64: 2, 7, 7>}]} {
    %c0 = arith.constant 0 : index
    %c0_0 = arith.constant 0 : index
    %c0_1 = arith.constant 0 : index
    %0 = vector.load %arg1[%c0, %c0_0, %c0_1] : memref<1x7x7xf32, #tpu.memory_space<vmem>>, vector<1x7x7xf32>
    %1 = vector.shape_cast %0 : vector<1x7x7xf32> to vector<1x7x7xf32>
    %2 = vector.broadcast %1 : vector<1x7x7xf32> to vector<2x7x7xf32>
    %c0_2 = arith.constant 0 : index
    %c0_3 = arith.constant 0 : index
    %c0_4 = arith.constant 0 : index
    %3 = vector.load %arg2[%c0_2, %c0_3, %c0_4] : memref<2x7x7xf32, #tpu.memory_space<vmem>>, vector<2x7x7xf32>
    tpu.vector_store %arg2[%c0_2, %c0_3, %c0_4], %2 {strides = array<i32>} : memref<2x7x7xf32, #tpu.memory_space<vmem>>, vector<2x7x7xf32>,
    return
  }
  func.func @transform_0(%arg0: i32) -> (i32, i32, i32) {
    %c0_i32 = arith.constant 0 : i32
    %c0_i32_0 = arith.constant 0 : i32
    %c0_i32_1 = arith.constant 0 : i32
    %c0_i32_2 = arith.constant 0 : i32
    return %c0_i32, %c0_i32_0, %c0_i32_1 : i32, i32, i32
  }
  func.func @transform_1(%arg0: i32) -> (i32, i32, i32) {
    %c0_i32 = arith.constant 0 : i32
    %c0_i32_0 = arith.constant 0 : i32
    %c0_i32_1 = arith.constant 0 : i32
    return %arg0, %c0_i32, %c0_i32_0 : i32, i32, i32
  }
}

</mosaic_0001>

<bundles_post_ra>
// kernel: tpu_custom_call.1
= control target key start
LH: loop header
LB: loop body
LE: loop exit
PB: predicated region body
PF: predicated region fallthrough
CT: control target
= control target key end

     0   :  { %vm9_vm0 = vcmask 55296   ;;  %s35_s0 = inlined_call_operand.vmem [shape: f32[1,7,7], index: 0, kind: input, shape index: {}]   ;;  %s36_s1 = inlined_call_operand.vmem [shape: f32[2,7,7], index: 1, kind: output, shape index: {}]  }
   0x1   :  { %v8_v0 = vld [vmem:[%s35_s0] sm:$0x7f] }
   0x2   :  { %10 = vst.msk [vmem:[%s36_s1] sm:$0x7f] %vm9_vm0, %v8_v0  ;;  %11 = vst.msk [vmem:[%s36_s1 + $0x8] sm:$0x7f] %vm9_vm0, %v8_v0 }

</bundles_post_ra>
